<compile_context>
chip_gen: v6e
topology: v6e:2x2x1
jax: 0.10.0
libtpu: 0.0.40
codegen_flags: <defaults>
</compile_context>

<pallas_src>
import functools

import jax
import jax.numpy as jnp
from jax.experimental import pallas as pl
from jax.experimental.pallas import tpu as pltpu


_LANE = 128      # feature dims padded to multiples of the 128-wide lane axis
_SUBLANE = 16    # bf16 sublane packing: batch tiles padded to multiples of 16


def _round_up(x, m):
    return ((x + m - 1) // m) * m


def _pick_vmem_limit_bytes():
    """Per-generation VMEM limit: headroom on v7x (64 MiB/TC), ~100 MiB on v5e/v6e."""
    try:
        cap = pltpu.get_tpu_info().vmem_capacity_bytes
    except Exception:
        cap = 128 << 20
    return int(min((cap * 4) // 5, 100 << 20))


def _mlp_kernel(*refs, num_hidden, activation):
    """Fused MLP forward for one batch tile.

    refs = (x_ref,
            w_0, b_0, ..., w_{L-1}, b_{L-1},   # hidden layers
            w_out, b_out,
            o_ref)
    """
    n_params = 2 * (num_hidden + 1)
    x_ref = refs[0]
    param_refs = refs[1:1 + n_params]
    o_ref = refs[1 + n_params]

    def act(y):
        if activation == "relu":
            return jnp.maximum(y, 0.0)
        if activation == "tanh":
            return jnp.tanh(y)
        raise ValueError(f"Unknown activation function: {activation}")

    h = x_ref[...]                                    # bf16 [TB, F_pad]
    for l in range(num_hidden):                       # static loop -> unrolled
        w_ref, b_ref = param_refs[2 * l], param_refs[2 * l + 1]
        y = jnp.dot(h, w_ref[...], preferred_element_type=jnp.float32)  # MXU, f32 acc
        # Dropout: identity in eval mode.
        h = act(y + b_ref[...]).astype(jnp.bfloat16)  # value stays live in vregs/VMEM
    w_out_ref, b_out_ref = param_refs[-2], param_refs[-1]
    y = jnp.dot(h, w_out_ref[...], preferred_element_type=jnp.float32)
    o_ref[...] = (y + b_out_ref[...]).astype(o_ref.dtype)


def make_feedforward(n_classes, n_features, hidden_size, layers, activation_type,
                     *, batch_tile=512):
    """Returns (prepare_params, apply).

    prepare_params: pads/casts the un-padded f32 params ONCE (hoisted out of the
                    hot path).
    apply:          jitted per-call forward, x:[batch, n_features] -> [batch, n_classes].
    """
    if activation_type not in ("relu", "tanh"):
        raise ValueError(f"Unknown activation function: {activation_type}")

    num_hidden = layers
    f_pad = _round_up(n_features, _LANE)
    h_pad = _round_up(hidden_size, _LANE)
    c_pad = _round_up(n_classes, _LANE)
    vmem_limit = _pick_vmem_limit_bytes()

    def _pad2(a, rows, cols, dtype):
        return jnp.pad(
            a, ((0, rows - a.shape[0]), (0, cols - a.shape[1]))
        ).astype(dtype)

    def prepare_params(hidden_params, output_params):
        """Pad + cast weights once; reuse the result across forward calls."""
        flat = []
        in_dim = f_pad
        for w, b in hidden_params:
            flat.append(_pad2(w, in_dim, h_pad, jnp.bfloat16))   # bf16 MXU inputs
            flat.append(_pad2(b, 1, h_pad, jnp.float32))         # f32 bias
            in_dim = h_pad
        w_out, b_out = output_params
        flat.append(_pad2(w_out, h_pad, c_pad, jnp.bfloat16))
        flat.append(_pad2(b_out, 1, c_pad, jnp.float32))
        return tuple(flat)

    kernel = functools.partial(
        _mlp_kernel, num_hidden=num_hidden, activation=activation_type
    )

    # TODO(synk): weight-streaming path (stacked (L,h_pad,h_pad) weights + manual
    # double-buffered make_async_copy) for hidden sizes whose resident bf16
    # weights exceed the per-TC VMEM budget (matters first on v7x, 64 MiB/TC).
    # TODO(synk): optional fp8(e4m3) weight storage on v7x to halve weight
    # HBM traffic / VMEM residency (needs an accuracy check).
    # TODO(synk): ragged last batch tile via masked store instead of wrapper-side
    # jnp.pad + output slice (only matters for large, misaligned batches).

    @jax.jit
    def apply(x, flat_params):
        batch = x.shape[0]
        assert x.shape[1] == n_features

        # Batch tiling: keep >= 2 grid steps when the batch allows it so both
        # v7x TensorCores get work under dimension_semantics=("parallel",).
        b_ceil = _round_up(batch, _SUBLANE)
        if b_ceil >= 2 * batch_tile:
            tb = batch_tile
        else:
            tb = min(batch_tile,
                     max(_SUBLANE, _round_up(pl.cdiv(b_ceil, 2), _SUBLANE)))
        b_pad = _round_up(b_ceil, tb)

        x_bf = x.astype(jnp.bfloat16)
        if (b_pad, f_pad) != (batch, n_features):
            x_bf = jnp.pad(x_bf, ((0, b_pad - batch), (0, f_pad - n_features)))

        # Weights/biases: constant index_map -> VMEM-resident across grid steps.
        param_specs = [pl.BlockSpec(p.shape, lambda i: (0, 0)) for p in flat_params]

        flops = 2 * b_pad * (f_pad * h_pad
                             + max(num_hidden - 1, 0) * h_pad * h_pad
                             + h_pad * c_pad)
        transcendentals = b_pad * h_pad * num_hidden if activation_type == "tanh" else 0
        bytes_accessed = int(
            b_pad * f_pad * 2
            + sum(int(p.size) * p.dtype.itemsize for p in flat_params)
            + b_pad * c_pad * 4
        )

        out_padded = pl.pallas_call(
            kernel,
            out_shape=jax.ShapeDtypeStruct((b_pad, c_pad), jnp.float32),
            grid_spec=pltpu.PrefetchScalarGridSpec(
                num_scalar_prefetch=0,
                grid=(b_pad // tb,),
                in_specs=[pl.BlockSpec((tb, f_pad), lambda i: (i, 0))] + param_specs,
                out_specs=pl.BlockSpec((tb, c_pad), lambda i: (i, 0)),
            ),
            compiler_params=pltpu.CompilerParams(
                dimension_semantics=("parallel",),     # v7x: shard batch over 2 TCs
                vmem_limit_bytes=vmem_limit,
            ),
            cost_estimate=pl.CostEstimate(
                flops=flops,
                transcendentals=transcendentals,
                bytes_accessed=bytes_accessed,
            ),
        )(x_bf, *flat_params)

        if (batch, n_classes) != (b_pad, c_pad):
            return out_padded[:batch, :n_classes]
        return out_padded

    return prepare_params, apply


def init_params(key, n_classes, n_features, hidden_size, layers):
    """Deterministic init matching torch.nn.Linear's default U(-1/sqrt(in), 1/sqrt(in)).

    Weights are [in_features, out_features] (transpose of torch's [out, in]) so the
    kernel computes y = x @ W + b; biases are [1, out_features].
    """
    params = []
    input_size = n_features
    for _ in range(layers):
        key, kw, kb = jax.random.split(key, 3)
        bound = 1.0 / (input_size ** 0.5)
        w = jax.random.uniform(kw, (input_size, hidden_size), jnp.float32, -bound, bound)
        b = jax.random.uniform(kb, (1, hidden_size), jnp.float32, -bound, bound)
        params.append((w, b))
        input_size = hidden_size
    key, kw, kb = jax.random.split(key, 3)
    bound = 1.0 / (input_size ** 0.5)
    w_out = jax.random.uniform(kw, (input_size, n_classes), jnp.float32, -bound, bound)
    b_out = jax.random.uniform(kb, (1, n_classes), jnp.float32, -bound, bound)
    return params, (w_out, b_out)


def feedforward_reference(x, hidden_params, output_params, activation_type):
    """Pure-JAX reference with the same bf16-input / f32-accumulate numerics."""
    act = {"relu": lambda v: jnp.maximum(v, 0.0), "tanh": jnp.tanh}[activation_type]
    h = x.astype(jnp.bfloat16)
    for w, b in hidden_params:
        y = jnp.dot(h, w.astype(jnp.bfloat16),
                    preferred_element_type=jnp.float32) + b
        h = act(y).astype(jnp.bfloat16)
    w_out, b_out = output_params
    return jnp.dot(h, w_out.astype(jnp.bfloat16),
                   preferred_element_type=jnp.float32) + b_out


if __name__ == "__main__":
    # TODO(synk): training-mode dropout masking not implemented (inference/eval semantics).
    batch = 8
    n_features = 32
    hidden_size = 64
    n_classes = 8
    layers = 2

    key = jax.random.PRNGKey(0)
    key, kx, kp = jax.random.split(key, 3)
    x = jax.random.normal(kx, (batch, n_features), jnp.float32)
    hidden_params, output_params = init_params(
        kp, n_classes, n_features, hidden_size, layers
    )

    for activation_type in ("relu", "tanh"):
        prepare_params, apply = make_feedforward(
            n_classes, n_features, hidden_size, layers, activation_type
        )
        flat_params = prepare_params(hidden_params, output_params)  # padded/cast once
        out = jax.block_until_ready(apply(x, flat_params))
        ref = feedforward_reference(x, hidden_params, output_params, activation_type)
        assert out.shape == (batch, n_classes), out.shape
        assert jnp.allclose(out, ref, atol=2e-2, rtol=2e-2), \
            f"mismatch vs reference ({activation_type})"

    print("KERNEL_OK")
</pallas_src>

<mosaic_0001>
module attributes {stable_mosaic.version = 11 : i64} {
  func.func @_mlp_kernel(%arg0: i32, %arg1: memref<16x128xbf16, #tpu.memory_space<vmem>>, %arg2: memref<128x128xbf16, #tpu.memory_space<vmem>>, %arg3: memref<1x128xf32, #tpu.memory_space<vmem>>, %arg4: memref<128x128xbf16, #tpu.memory_space<vmem>>, %arg5: memref<1x128xf32, #tpu.memory_space<vmem>>, %arg6: memref<128x128xbf16, #tpu.memory_space<vmem>>, %arg7: memref<1x128xf32, #tpu.memory_space<vmem>>, %arg8: memref<16x128xf32, #tpu.memory_space<vmem>>) attributes {dimension_semantics = [#tpu.dimension_semantics<parallel>], iteration_bounds = array<i64: 1>, scalar_prefetch = 0 : i64, scratch_operands = 0 : i64, tpu.core_type = #tpu.core_type<tc>, window_params = [{transform_indices = @transform_0, window_bounds = array<i64: 16, 128>}, {pipeline_mode = #tpu.pipeline_mode<synchronous>, transform_indices = @transform_1, window_bounds = array<i64: 128, 128>}, {pipeline_mode = #tpu.pipeline_mode<synchronous>, transform_indices = @transform_2, window_bounds = array<i64: 1, 128>}, {pipeline_mode = #tpu.pipeline_mode<synchronous>, transform_indices = @transform_3, window_bounds = array<i64: 128, 128>}, {pipeline_mode = #tpu.pipeline_mode<synchronous>, transform_indices = @transform_4, window_bounds = array<i64: 1, 128>}, {pipeline_mode = #tpu.pipeline_mode<synchronous>, transform_indices = @transform_5, window_bounds = array<i64: 128, 128>}, {pipeline_mode = #tpu.pipeline_mode<synchronous>, transform_indices = @transform_6, window_bounds = array<i64: 1, 128>}, {transform_indices = @transform_7, window_bounds = array<i64: 16, 128>}]} {
    %c0 = arith.constant 0 : index
    %c0_0 = arith.constant 0 : index
    %0 = vector.load %arg1[%c0, %c0_0] : memref<16x128xbf16, #tpu.memory_space<vmem>>, vector<16x128xbf16>
    %c0_1 = arith.constant 0 : index
    %c0_2 = arith.constant 0 : index
    %1 = vector.load %arg2[%c0_1, %c0_2] : memref<128x128xbf16, #tpu.memory_space<vmem>>, vector<128x128xbf16>
    %cst = arith.constant dense<0.000000e+00> : vector<16x128xf32>
    %2 = tpu.matmul %0, %1, %cst {dimension_numbers = #tpu.dot_dimension_numbers<[1], [0], [0], [1], [0, 0, 1, 1], [], []>} : vector<16x128xbf16>, vector<128x128xbf16>, vector<16x128xf32> -> vector<16x128xf32>
    %c0_3 = arith.constant 0 : index
    %c0_4 = arith.constant 0 : index
    %3 = vector.load %arg3[%c0_3, %c0_4] : memref<1x128xf32, #tpu.memory_space<vmem>>, vector<1x128xf32>
    %4 = vector.broadcast %3 : vector<1x128xf32> to vector<16x128xf32>
    %5 = arith.addf %2, %4 : vector<16x128xf32>
    %cst_5 = arith.constant 0.000000e+00 : f32
    %6 = vector.broadcast %cst_5 : f32 to vector<16x128xf32>
    %7 = arith.maximumf %5, %6 : vector<16x128xf32>
    %8 = arith.truncf %7 : vector<16x128xf32> to vector<16x128xbf16>
    %c0_6 = arith.constant 0 : index
    %c0_7 = arith.constant 0 : index
    %9 = vector.load %arg4[%c0_6, %c0_7] : memref<128x128xbf16, #tpu.memory_space<vmem>>, vector<128x128xbf16>
    %cst_8 = arith.constant dense<0.000000e+00> : vector<16x128xf32>
    %10 = tpu.matmul %8, %9, %cst_8 {dimension_numbers = #tpu.dot_dimension_numbers<[1], [0], [0], [1], [0, 0, 1, 1], [], []>} : vector<16x128xbf16>, vector<128x128xbf16>, vector<16x128xf32> -> vector<16x128xf32>
    %c0_9 = arith.constant 0 : index
    %c0_10 = arith.constant 0 : index
    %11 = vector.load %arg5[%c0_9, %c0_10] : memref<1x128xf32, #tpu.memory_space<vmem>>, vector<1x128xf32>
    %12 = vector.broadcast %11 : vector<1x128xf32> to vector<16x128xf32>
    %13 = arith.addf %10, %12 : vector<16x128xf32>
    %cst_11 = arith.constant 0.000000e+00 : f32
    %14 = vector.broadcast %cst_11 : f32 to vector<16x128xf32>
    %15 = arith.maximumf %13, %14 : vector<16x128xf32>
    %16 = arith.truncf %15 : vector<16x128xf32> to vector<16x128xbf16>
    %c0_12 = arith.constant 0 : index
    %c0_13 = arith.constant 0 : index
    %17 = vector.load %arg6[%c0_12, %c0_13] : memref<128x128xbf16, #tpu.memory_space<vmem>>, vector<128x128xbf16>
    %cst_14 = arith.constant dense<0.000000e+00> : vector<16x128xf32>
    %18 = tpu.matmul %16, %17, %cst_14 {dimension_numbers = #tpu.dot_dimension_numbers<[1], [0], [0], [1], [0, 0, 1, 1], [], []>} : vector<16x128xbf16>, vector<128x128xbf16>, vector<16x128xf32> -> vector<16x128xf32>
    %c0_15 = arith.constant 0 : index
    %c0_16 = arith.constant 0 : index
    %19 = vector.load %arg7[%c0_15, %c0_16] : memref<1x128xf32, #tpu.memory_space<vmem>>, vector<1x128xf32>
    %20 = vector.broadcast %19 : vector<1x128xf32> to vector<16x128xf32>
    %21 = arith.addf %18, %20 : vector<16x128xf32>
    %c0_17 = arith.constant 0 : index
    %c0_18 = arith.constant 0 : index
    %22 = vector.load %arg8[%c0_17, %c0_18] : memref<16x128xf32, #tpu.memory_space<vmem>>, vector<16x128xf32>
    tpu.vector_store %arg8[%c0_17, %c0_18], %21 {strides = array<i32>} : memref<16x128xf32, #tpu.memory_space<vmem>>, vector<16x128xf32>,
    return
  }
  func.func @transform_0(%arg0: i32) -> (i32, i32) {
    %c0_i32 = arith.constant 0 : i32
    %c0_i32_0 = arith.constant 0 : i32
    return %arg0, %c0_i32 : i32, i32
  }
  func.func @transform_1(%arg0: i32) -> (i32, i32) {
    %c0_i32 = arith.constant 0 : i32
    %c0_i32_0 = arith.constant 0 : i32
    %c0_i32_1 = arith.constant 0 : i32
    return %c0_i32, %c0_i32_0 : i32, i32
  }
  func.func @transform_2(%arg0: i32) -> (i32, i32) {
    %c0_i32 = arith.constant 0 : i32
    %c0_i32_0 = arith.constant 0 : i32
    %c0_i32_1 = arith.constant 0 : i32
    return %c0_i32, %c0_i32_0 : i32, i32
  }
  func.func @transform_3(%arg0: i32) -> (i32, i32) {
    %c0_i32 = arith.constant 0 : i32
    %c0_i32_0 = arith.constant 0 : i32
    %c0_i32_1 = arith.constant 0 : i32
    return %c0_i32, %c0_i32_0 : i32, i32
  }
  func.func @transform_4(%arg0: i32) -> (i32, i32) {
    %c0_i32 = arith.constant 0 : i32
    %c0_i32_0 = arith.constant 0 : i32
    %c0_i32_1 = arith.constant 0 : i32
    return %c0_i32, %c0_i32_0 : i32, i32
  }
  func.func @transform_5(%arg0: i32) -> (i32, i32) {
    %c0_i32 = arith.constant 0 : i32
    %c0_i32_0 = arith.constant 0 : i32
    %c0_i32_1 = arith.constant 0 : i32
    return %c0_i32, %c0_i32_0 : i32, i32
  }
  func.func @transform_6(%arg0: i32) -> (i32, i32) {
    %c0_i32 = arith.constant 0 : i32
    %c0_i32_0 = arith.constant 0 : i32
    %c0_i32_1 = arith.constant 0 : i32
    return %c0_i32, %c0_i32_0 : i32, i32
  }
  func.func @transform_7(%arg0: i32) -> (i32, i32) {
    %c0_i32 = arith.constant 0 : i32
    %c0_i32_0 = arith.constant 0 : i32
    return %arg0, %c0_i32 : i32, i32
  }
}

</mosaic_0001>

<bundles_post_ra>
// kernel: apply.1
= control target key start
LH: loop header
LB: loop body
LE: loop exit
PB: predicated region body
PF: predicated region fallthrough
CT: control target
= control target key end

     0   :  { %12 = vsyncpa [#allocation3], 0  ;;  %s741_s0 = inlined_call_operand.vmem [shape: bf16[16,128], index: 0, kind: input, shape index: {}]   ;;  %s742_s1 = inlined_call_operand.hbm [shape: bf16[128,128], index: 1, kind: input, shape index: {}]   ;;  %s743_s2 = inlined_call_operand.vmem [shape: f32[1,128], index: 2, kind: input, shape index: {}]   ;;  %s744_s3 = inlined_call_operand.hbm [shape: bf16[128,128], index: 3, kind: input, shape index: {}]   ;;  %s745_s4 = inlined_call_operand.vmem [shape: f32[1,128], index: 4, kind: input, shape index: {}]   ;;  %s746_s5 = inlined_call_operand.hbm [shape: bf16[128,128], index: 5, kind: input, shape index: {}]   ;;  %s747_s6 = inlined_call_operand.vmem [shape: f32[1,128], index: 6, kind: input, shape index: {}]   ;;  %s748_s7 = inlined_call_operand.vmem [shape: f32[16,128], index: 7, kind: output, shape index: {}]  }
   0x1   :  { %13 = vsyncpa [#allocation5], 0  ;;  %s637_s24 = smov [#allocation4]   ;;  %s638_s26 = smov [#allocation2]  }
   0x2   :  { %s35_s25 = sshll.u32 %s637_s24, 4  ;;  %s21_s27 = sshll.u32 %s638_s26, 4  ;;  %s36_s25 = int_to_ptr.vmem [resolvable:$true] %s35_s25  ;;  %s22_s27 = int_to_ptr.vmem [resolvable:$true] %s21_s27 }
   0x3   :  { %s581_s28 = scalar_lea.vmem %s36_s25, 1024  ;;  %p586_p1 = scmp.lt.s32.totalorder %s36_s25, %s36_s25 }
   0x4   :  { %p582_p0 = scmp.ne.s32.totalorder %s36_s25, %s581_s28  ;;  %p587_p2 = scmp.lt.s32.totalorder %s581_s28, %s581_s28 }
   0x6   :  { %p588_p3 = por %p587_p2, %p586_p1 }
   0x8   :  { %p589_p4 = pnand %p588_p3, %p582_p0 }
   0xa   :  { %592 = shalt.err (!%p589_p4)
}
   0xb   :  { %s639_s29 = smov 64   ;;  %s640_s30 = smov 4  }
   0xc   :  { %41 = dma.hbm_to_vmem [thread:$0]  %s744_s3, 1024, %s36_s25, [#allocation5], %s639_s29, %s639_s29, %s640_s30  }
   0xd   :  { %s601_s10 = scalar_lea.vmem %s22_s27, 1024  ;;  %p606_p6 = scmp.lt.s32.totalorder %s22_s27, %s22_s27 }
   0xe   :  { %p602_p5 = scmp.ne.s32.totalorder %s22_s27, %s601_s10  ;;  %p607_p7 = scmp.lt.s32.totalorder %s601_s10, %s601_s10 }
  0x10   :  { %p608_p8 = por %p607_p7, %p606_p6 }
  0x12   :  { %p609_p9 = pnand %p608_p8, %p602_p5 }
  0x14   :  { %612 = shalt.err (!%p609_p9)
}
  0x15   :  { %27 = dma.hbm_to_vmem [thread:$0]  %s742_s1, 1024, %s22_s27, [#allocation3], %s639_s29, %s639_s29, %s640_s30  }
  0x16   :  { %s641_s13 = smov [#allocation6]  }
  0x17   :  { %s49_s14 = sshll.u32 %s641_s13, 4  ;;  %s50_s14 = int_to_ptr.vmem [resolvable:$true] %s49_s14 }
  0x18   :  { %s621_s15 = scalar_lea.vmem %s50_s14, 1024  ;;  %p626_p11 = scmp.lt.s32.totalorder %s50_s14, %s50_s14 }
  0x19   :  { %p622_p10 = scmp.ne.s32.totalorder %s50_s14, %s621_s15  ;;  %p627_p12 = scmp.lt.s32.totalorder %s621_s15, %s621_s15 }
  0x1b   :  { %p628_p13 = por %p627_p12, %p626_p11 }
  0x1d   :  { %p629_p0 = pnand %p628_p13, %p622_p10 }
  0x1f   :  { %632 = shalt.err (!%p629_p0)
}
  0x20   :  { %55 = dma.hbm_to_vmem [thread:$0]  %s746_s5, 1024, %s50_s14, [#allocation5], %s639_s29, %s639_s29, %s640_s30  }
  0x21   :  { %633 = dma.done.wait [#allocation3], 1024  }
  0x22   :  { %634 = vsyncadd [#allocation3], 4294966272 }
  0x23   :  { %635 = dma.done.wait [#allocation5], 2048  }
  0x24   :  { %636 = vsyncadd [#allocation5], 4294965248  ;;  %v642_v0 = vmov 0.0   ;;  %vm643_vm0 = vmmov 0   ;;  %v548_v1 = vld [vmem:[#allocation2 + $0x38] sm:$0xff]   ;;  %v549_v2 = vld [vmem:[#allocation2 + $0x30] sm:$0xff]  }
  0x25   :  { %481 = vmatprep.subr.bf16.mxu0 %v642_v0  ;;  %497 = vmatprep.mubr.msk.bf16.mxu0 %vm643_vm0, %v642_v0  ;;  %v550_v3 = vld [vmem:[#allocation2 + $0x28] sm:$0xff]   ;;  %v557_v4 = vld [vmem:[#allocation4 + $0x38] sm:$0xff]   ;;  %v551_v5 = vld [vmem:[#allocation2 + $0x20] sm:$0xff]  }
  0x26   :  { %501 = vmatprep.subr.bf16.mxu1 %v642_v0  ;;  %517 = vmatprep.mubr.msk.bf16.mxu1 %vm643_vm0, %v642_v0  ;;  %v558_v6 = vld [vmem:[#allocation4 + $0x30] sm:$0xff]   ;;  %v552_v7 = vld [vmem:[#allocation2 + $0x18] sm:$0xff]   ;;  %v559_v8 = vld [vmem:[#allocation4 + $0x28] sm:$0xff]  }
  0x27   :  { %482 = vmatpush3.bf16.msra.mxu0 %v548_v1  ;;  %502 = vmatpush3.bf16.msra.mxu1 %v557_v4  ;;  %v553_v9 = vld [vmem:[#allocation2 + $0x10] sm:$0xff]   ;;  %v560_v10 = vld [vmem:[#allocation4 + $0x20] sm:$0xff]   ;;  %v554_v11 = vld [vmem:[#allocation2 + $0x8] sm:$0xff]  }
  0x28   :  { %483 = vmatprep.subr.bf16.mxu0 %v642_v0  ;;  %503 = vmatprep.subr.bf16.mxu1 %v642_v0  ;;  %v561_v12 = vld [vmem:[#allocation4 + $0x18] sm:$0xff]   ;;  %v555_v13 = vld [vmem:[#allocation2] sm:$0xff]   ;;  %v562_v15 = vld [vmem:[#allocation4 + $0x10] sm:$0xff]  }
  0x29   :  { %v556_v14 = vld [vmem:[%s741_s0] sm:$0xff]   ;;  %v563_v16 = vld [vmem:[#allocation4 + $0x8] sm:$0xff]   ;;  %v565_v18 = vld [vmem:[#allocation6 + $0x38] sm:$0xff]  }
  0x2a   :  { %v564_v17 = vld [vmem:[#allocation4] sm:$0xff]   ;;  %v566_v19 = vld [vmem:[#allocation6 + $0x30] sm:$0xff]   ;;  %v567_v20 = vld [vmem:[#allocation6 + $0x28] sm:$0xff]  }
  0x2b   :  { %484 = vmatpush3.bf16.msra.mxu0 %v549_v2  ;;  %504 = vmatpush3.bf16.msra.mxu1 %v558_v6  ;;  %v568_v21 = vld [vmem:[#allocation6 + $0x20] sm:$0xff]   ;;  %v569_v22 = vld [vmem:[#allocation6 + $0x18] sm:$0xff]   ;;  %v570_v33 = vld [vmem:[#allocation6 + $0x10] sm:$0xff]  }
  0x2c   :  { %485 = vmatprep.subr.bf16.mxu0 %v642_v0  ;;  %505 = vmatprep.subr.bf16.mxu1 %v642_v0  ;;  %v426_v23 = vld [vmem:[%s743_s2] ss:$0 sm:$0xff]  ;;  %v571_v34 = vld [vmem:[#allocation6 + $0x8] sm:$0xff]  }
  0x2d   :  { %v572_v35 = vld [vmem:[#allocation6] sm:$0xff]  }
  0x2e   :  { %v436_v36 = vld [vmem:[%s745_s4] ss:$0 sm:$0xff] }
  0x2f   :  { %486 = vmatpush3.bf16.msra.mxu0 %v550_v3  ;;  %506 = vmatpush3.bf16.msra.mxu1 %v559_v8  ;;  %v445_v46 = vld [vmem:[%s747_s6] ss:$0 sm:$0xff] }
  0x30   :  { %487 = vmatprep.subr.bf16.mxu0 %v642_v0  ;;  %507 = vmatprep.subr.bf16.mxu1 %v642_v0 }
  0x33   :  { %488 = vmatpush3.bf16.msra.mxu0 %v551_v5  ;;  %508 = vmatpush3.bf16.msra.mxu1 %v560_v10 }
  0x34   :  { %489 = vmatprep.subr.bf16.mxu0 %v642_v0  ;;  %509 = vmatprep.subr.bf16.mxu1 %v642_v0 }
  0x37   :  { %490 = vmatpush3.bf16.msra.mxu0 %v552_v7  ;;  %510 = vmatpush3.bf16.msra.mxu1 %v561_v12 }
  0x38   :  { %491 = vmatprep.subr.bf16.mxu0 %v642_v0  ;;  %511 = vmatprep.subr.bf16.mxu1 %v642_v0 }
  0x3b   :  { %492 = vmatpush3.bf16.msra.mxu0 %v553_v9  ;;  %512 = vmatpush3.bf16.msra.mxu1 %v562_v15 }
  0x3c   :  { %493 = vmatprep.subr.bf16.mxu0 %v642_v0  ;;  %513 = vmatprep.subr.bf16.mxu1 %v642_v0 }
  0x3f   :  { %494 = vmatpush3.bf16.msra.mxu0 %v554_v11  ;;  %514 = vmatpush3.bf16.msra.mxu1 %v563_v16 }
  0x40   :  { %495 = vmatprep.subr.bf16.mxu0 %v642_v0  ;;  %515 = vmatprep.subr.bf16.mxu1 %v642_v0 }
  0x43   :  { %496 = vmatpush3.bf16.msra.mxu0 %v555_v13  ;;  %516 = vmatpush3.bf16.msra.mxu1 %v564_v17 }
  0x44   :  { %521 = vmatprep.subr.bf16.mxu0 %v642_v0 }
  0x46   :  { %498 = vmatmul.mubr.bf16.vlgmr.msra.gmra.mxu0 %v556_v14 }
  0x47   :  { %537 = vmatprep.mubr.msk.bf16.mxu0 %vm643_vm0, %v642_v0  ;;  %522 = vmatpush3.bf16.msra.mxu0 %v565_v18 }
  0x48   :  { %523 = vmatprep.subr.bf16.mxu0 %v642_v0 }
  0x4b   :  { %524 = vmatpush3.bf16.msra.mxu0 %v566_v19 }
  0x4c   :  { %525 = vmatprep.subr.bf16.mxu0 %v642_v0 }
  0x4f   :  { %526 = vmatpush3.bf16.msra.mxu0 %v567_v20 }
  0x50   :  { %527 = vmatprep.subr.bf16.mxu0 %v642_v0 }
  0x53   :  { %528 = vmatpush3.bf16.msra.mxu0 %v568_v21 }
  0x54   :  { %529 = vmatprep.subr.bf16.mxu0 %v642_v0 }
  0x57   :  { %530 = vmatpush3.bf16.msra.mxu0 %v569_v22 }
  0x58   :  { %531 = vmatprep.subr.bf16.mxu0 %v642_v0 }
  0x5b   :  { %532 = vmatpush3.bf16.msra.mxu0 %v570_v33 }
  0x5c   :  { %533 = vmatprep.subr.bf16.mxu0 %v642_v0 }
  0x5f   :  { %534 = vmatpush3.bf16.msra.mxu0 %v571_v34 }
  0x60   :  { %535 = vmatprep.subr.bf16.mxu0 %v642_v0 }
  0x63   :  { %536 = vmatpush3.bf16.msra.mxu0 %v572_v35 }
 0x106   :  { %v181_v24 = vpop.f32.mrf.mxu0 }
 0x107   :  { %v182_v26 = vadd.f32 %v426_v23, %v181_v24 }
 0x108   :  { %v499_v25 = vpop.f32.mrf.mxu0 }
 0x109   :  { %v188_v30 = vmax.f32 %v182_v26, 0.0 }
 0x10a   :  { %v184_v27 = vpop.f32.mrf.mxu0 }
 0x10b   :  { %v185_v28 = vadd.f32 %v426_v23, %v184_v27 }
 0x10c   :  { %v500_v29 = vpop.f32.mrf.mxu0 }
 0x10d   :  { %v189_v31 = vmax.f32 %v185_v28, 0.0 }
 0x10f   :  { %v190_v32 = vpack.c.bf16 %v189_v31, %v188_v30 }
 0x111   :  { %518 = vmatmul.mubr.bf16.vlgmr.msra.gmra.mxu1 %v190_v32 }
 0x1d1   :  { %v296_v37 = vpop.f32.mrf.mxu1 }
 0x1d2   :  { %v297_v39 = vadd.f32 %v436_v36, %v296_v37 }
 0x1d3   :  { %v519_v38 = vpop.f32.mrf.mxu1 }
 0x1d4   :  { %v303_v43 = vmax.f32 %v297_v39, 0.0 }
 0x1d5   :  { %v299_v40 = vpop.f32.mrf.mxu1 }
 0x1d6   :  { %v300_v41 = vadd.f32 %v436_v36, %v299_v40 }
 0x1d7   :  { %v520_v42 = vpop.f32.mrf.mxu1 }
 0x1d8   :  { %v304_v44 = vmax.f32 %v300_v41, 0.0 }
 0x1da   :  { %v305_v45 = vpack.c.bf16 %v304_v44, %v303_v43 }
 0x1dc   :  { %538 = vmatmul.mubr.bf16.vlgmr.msra.gmra.mxu0 %v305_v45 }
 0x29c   :  { %v411_v47 = vpop.f32.mrf.mxu0 }
 0x29d   :  { %v412_v48 = vadd.f32 %v445_v46, %v411_v47 }
 0x29e   :  { %v539_v49 = vpop.f32.mrf.mxu0 }
 0x29f   :  { %418 = vst [vmem:[%s748_s7] sm:$0xff] %v412_v48 }
 0x2a0   :  { %v414_v50 = vpop.f32.mrf.mxu0 }
 0x2a1   :  { %v415_v51 = vadd.f32 %v445_v46, %v414_v50 }
 0x2a2   :  { %v540_v52 = vpop.f32.mrf.mxu0 }
 0x2a3   :  { %419 = vst [vmem:[%s748_s7 + $0x8] sm:$0xff] %v415_v51 }
 0x2a4   :  { %424 = vsyncpa [#allocation3], 1 }
 0x2a5   :  { %425 = vsyncpa [#allocation5], 1 }

</bundles_post_ra>
